<compile_context>
chip_gen: v7x
topology: tpu7x:2x2x1
jax: 0.10.0
libtpu: 0.0.40
codegen_flags: <defaults>
</compile_context>

<pallas_src>
import functools

import jax
import jax.numpy as jnp
from jax.experimental import pallas as pl
from jax.experimental.pallas import tpu as pltpu


def _round_up(a, b):
    return ((a + b - 1) // b) * b


def _lafm_kernel(
    x_ref,      # (Ct, TS)      transformer feature tile, channel-major
    y_ref,      # (Cc, TS)      cnn feature tile, channel-major
    wx_ref,     # (3*Cf, Ct)    bf16  [Wt^T ; (Wt·Wfa_x·W1)^T ; (Wt·Wfb_x·W2)^T]
    wy_ref,     # (3*Cf, Cc)    bf16  [Wc^T ; (Wc·Wfa_y·W1)^T ; (Wc·Wfb_y·W2)^T]
    b_ref,      # (4*Cf, 1)     f32   [bt ; bc ; b_sx ; b_sy] as columns
    out_ref,    # (Cf, TS)
    *, cf,
):
    # Feed bf16 operands to the MXU. If the producer already hands us bf16
    # there is no cast at all; if f32 arrives, the downcast happens per-tile
    # in VMEM (no extra HBM pass).
    x = x_ref[...]
    y = y_ref[...]
    if x.dtype != jnp.bfloat16:
        x = x.astype(jnp.bfloat16)
    if y.dtype != jnp.bfloat16:
        y = y.astype(jnp.bfloat16)

    # Two dots instead of six: each output lane depends only on its own input
    # lane, so the spatial axis stays lane-local. f32 accumulation on the MXU.
    rx = jnp.dot(wx_ref[...], x, preferred_element_type=jnp.float32)  # (3Cf, TS)
    ry = jnp.dot(wy_ref[...], y, preferred_element_type=jnp.float32)  # (3Cf, TS)

    b = b_ref[...]                         # load bias slab once
    bt = b[:cf]
    bc = b[cf:2 * cf]
    b_sx = b[2 * cf:3 * cf]
    b_sy = b[3 * cf:]

    x_ori = rx[:cf] + bt
    y_ori = ry[:cf] + bc
    sx = jax.nn.sigmoid(rx[cf:2 * cf] + ry[cf:2 * cf] + b_sx)
    sy = jax.nn.sigmoid(rx[2 * cf:] + ry[2 * cf:] + b_sy)

    # softmax([sx, sy], axis=0)[0] == sigmoid(sx - sy), exactly.
    w0 = jax.nn.sigmoid(sx - sy)
    out = y_ori + w0 * (x_ori - y_ori)
    out_ref[...] = out.astype(out_ref.dtype)


def lafm_forward(x_nchw, y_nchw, packed, *, tile_s=1024, out_dtype=jnp.bfloat16):
    """x_nchw: transformer feature (N, Ct, H, W); y_nchw: cnn feature (N, Cc, H, W).

    `packed` comes from pack_params(); returns (N, Cf, H, W) in `out_dtype`.
    No wrapper-side casts/pads/slices: inputs are consumed in their own dtype,
    channel-major, and the output comes back natively NCHW.
    """
    N, Ct, H, W = x_nchw.shape
    _, Cc, _, _ = y_nchw.shape
    wx, wy, b = packed["wx"], packed["wy"], packed["b"]
    Cf = b.shape[0] // 4

    HW = H * W
    ts = max(128, (int(tile_s) // 128) * 128)   # lane tile, multiple of 128
    ts = min(ts, _round_up(HW, 128))

    # NCHW -> (N, C, H*W): free reshape (no HBM transpose); pixels -> lanes.
    x = x_nchw.reshape(N, Ct, HW)
    y = y_nchw.reshape(N, Cc, HW)

    grid = (N, pl.cdiv(HW, ts))                 # ragged tail handled by Pallas

    out = pl.pallas_call(
        functools.partial(_lafm_kernel, cf=Cf),
        out_shape=jax.ShapeDtypeStruct((N, Cf, HW), out_dtype),
        grid_spec=pl.GridSpec(
            grid=grid,
            in_specs=[
                pl.BlockSpec((None, Ct, ts), lambda n, i: (n, 0, i)),
                pl.BlockSpec((None, Cc, ts), lambda n, i: (n, 0, i)),
                pl.BlockSpec(wx.shape, lambda n, i: (0, 0)),   # resident weights
                pl.BlockSpec(wy.shape, lambda n, i: (0, 0)),
                pl.BlockSpec(b.shape, lambda n, i: (0, 0)),
            ],
            out_specs=pl.BlockSpec((None, Cf, ts), lambda n, i: (n, 0, i)),
        ),
        compiler_params=pltpu.CompilerParams(
            dimension_semantics=("parallel", "parallel")),
    )(x, y, wx, wy, b)

    # (N, Cf, HW) -> (N, Cf, H, W): free reshape, already NCHW.
    return out.reshape(N, Cf, H, W)


def lafm_reference(x_nchw, y_nchw, params):
    """Pure-JAX f32 reference mirroring the PyTorch forward (residual=False)."""
    def conv1x1(t, w, b):  # t: (N, Cin, H, W), w: (Cin, Cout), b: (1, Cout)
        return jnp.einsum("nchw,cd->ndhw", t, w) + b[0][None, :, None, None]

    x = conv1x1(x_nchw, params["wt"], params["bt"])
    y = conv1x1(y_nchw, params["wc"], params["bc"])
    x_ori, y_ori = x, y
    cat = jnp.concatenate([x, y], axis=1)
    a = conv1x1(cat, params["wfa"], params["bfa"])
    b = conv1x1(cat, params["wfb"], params["bfb"])
    sx = jax.nn.sigmoid(conv1x1(a, params["w1"], params["b1"]))
    sy = jax.nn.sigmoid(conv1x1(b, params["w2"], params["b2"]))
    w = jax.nn.softmax(jnp.stack([sx, sy], axis=0), axis=0)
    return w[0] * x_ori + w[1] * y_ori


def make_params(key, channels_trans, channels_cnn, channels_fuse):
    """Deterministic synthetic parameters. Conv2d(out,in,1,1) weights are stored
    transposed as (in, out) matrices so the reference does X @ W + b."""
    ks = jax.random.split(key, 12)
    Cf = channels_fuse

    def w(k, cin, cout):
        return jax.random.normal(k, (cin, cout), jnp.float32) * 0.1

    def bias(k, cout):
        return jax.random.normal(k, (1, cout), jnp.float32) * 0.05

    # conv_fuse weight (2Cf -> 2Cf) split along its OUTPUT channels into two
    # halves, matching torch.split(xy_fuse, Cf, dim=1).
    wf_full = w(ks[4], 2 * Cf, 2 * Cf)
    bf_full = bias(ks[5], 2 * Cf)
    return {
        "wt": w(ks[0], channels_trans, Cf), "bt": bias(ks[1], Cf),
        "wc": w(ks[2], channels_cnn, Cf),   "bc": bias(ks[3], Cf),
        "wfa": wf_full[:, :Cf], "bfa": bf_full[:, :Cf],
        "wfb": wf_full[:, Cf:], "bfb": bf_full[:, Cf:],
        "w1": w(ks[6], Cf, Cf), "b1": bias(ks[7], Cf),
        "w2": w(ks[8], Cf, Cf), "b2": bias(ks[9], Cf),
    }


def pack_params(p):
    """Precompose the linear chain in f32 and pack weights for the kernel.

    Returns channel-major (transposed) slabs, cast once at the end:
      wx: (3*Cf, Ct) bf16 = [Wt^T ; (Wt·Wfa_x·W1)^T ; (Wt·Wfb_x·W2)^T]
      wy: (3*Cf, Cc) bf16 = [Wc^T ; (Wc·Wfa_y·W1)^T ; (Wc·Wfb_y·W2)^T]
      b : (4*Cf, 1)  f32  = [bt ; bc ; b_sx ; b_sy] as columns
    """
    Wt, bt = p["wt"], p["bt"]
    Wc, bc = p["wc"], p["bc"]
    Wfa, bfa = p["wfa"], p["bfa"]
    Wfb, bfb = p["wfb"], p["bfb"]
    W1, b1 = p["w1"], p["b1"]
    W2, b2 = p["w2"], p["b2"]
    Cf = Wt.shape[1]

    Wfa_x, Wfa_y = Wfa[:Cf], Wfa[Cf:]
    Wfb_x, Wfb_y = Wfb[:Cf], Wfb[Cf:]

    # All composition in f32; cast the final packed matrices exactly once.
    Ax = Wt @ Wfa_x @ W1          # (Ct, Cf)
    Ay = Wc @ Wfa_y @ W1          # (Cc, Cf)
    Bx = Wt @ Wfb_x @ W2
    By = Wc @ Wfb_y @ W2
    b_sx = bt @ Wfa_x @ W1 + bc @ Wfa_y @ W1 + bfa @ W1 + b1   # (1, Cf)
    b_sy = bt @ Wfb_x @ W2 + bc @ Wfb_y @ W2 + bfb @ W2 + b2   # (1, Cf)

    wx = jnp.concatenate([Wt.T, Ax.T, Bx.T], axis=0).astype(jnp.bfloat16)  # (3Cf, Ct)
    wy = jnp.concatenate([Wc.T, Ay.T, By.T], axis=0).astype(jnp.bfloat16)  # (3Cf, Cc)
    b = jnp.concatenate([bt, bc, b_sx, b_sy], axis=0)                      # (4, Cf)
    b = b.reshape(4 * Cf, 1).astype(jnp.float32)                           # (4Cf, 1)
    return {"wx": wx, "wy": wy, "b": b}


if __name__ == "__main__":
    key = jax.random.PRNGKey(0)
    k_x, k_y, k_p = jax.random.split(key, 3)

    N, H, W = 2, 16, 16
    channels_trans, channels_cnn, channels_fuse = 4, 8, 16

    x = jax.random.normal(k_x, (N, channels_trans, H, W), jnp.float32)
    y = jax.random.normal(k_y, (N, channels_cnn, H, W), jnp.float32)
    params = make_params(k_p, channels_trans, channels_cnn, channels_fuse)
    packed = pack_params(params)

    out = jax.block_until_ready(lafm_forward(x, y, packed, tile_s=1024))
    ref = jax.block_until_ready(lafm_reference(x, y, params))

    assert out.shape == (N, channels_fuse, H, W)
    # bf16 weights / in-kernel bf16 operands / bf16 output vs f32 reference.
    out_f32 = out.astype(jnp.float32)
    assert jnp.allclose(out_f32, ref, atol=3e-2, rtol=3e-2), (
        "mismatch vs reference; max abs err = "
        f"{float(jnp.max(jnp.abs(out_f32 - ref)))}")

    print("KERNEL_OK")
</pallas_src>

<mosaic_0001>
module attributes {stable_mosaic.version = 11 : i64} {
  func.func @_lafm_kernel(%arg0: i32, %arg1: i32, %arg2: memref<1x4x256xf32, #tpu.memory_space<vmem>>, %arg3: memref<1x8x256xf32, #tpu.memory_space<vmem>>, %arg4: memref<48x4xbf16, #tpu.memory_space<vmem>>, %arg5: memref<48x8xbf16, #tpu.memory_space<vmem>>, %arg6: memref<64x1xf32, #tpu.memory_space<vmem>>, %arg7: memref<1x16x256xbf16, #tpu.memory_space<vmem>>) attributes {dimension_semantics = [#tpu.dimension_semantics<parallel>, #tpu.dimension_semantics<parallel>], iteration_bounds = array<i64: 2, 1>, scalar_prefetch = 0 : i64, scratch_operands = 0 : i64, tpu.core_type = #tpu.core_type<tc>, window_params = [{transform_indices = @transform_0, window_bounds = array<i64: 1, 4, 256>}, {transform_indices = @transform_1, window_bounds = array<i64: 1, 8, 256>}, {pipeline_mode = #tpu.pipeline_mode<synchronous>, transform_indices = @transform_2, window_bounds = array<i64: 48, 4>}, {pipeline_mode = #tpu.pipeline_mode<synchronous>, transform_indices = @transform_3, window_bounds = array<i64: 48, 8>}, {pipeline_mode = #tpu.pipeline_mode<synchronous>, transform_indices = @transform_4, window_bounds = array<i64: 64, 1>}, {transform_indices = @transform_5, window_bounds = array<i64: 1, 16, 256>}]} {
    %c0 = arith.constant 0 : index
    %c0_0 = arith.constant 0 : index
    %c0_1 = arith.constant 0 : index
    %0 = vector.load %arg2[%c0, %c0_0, %c0_1] : memref<1x4x256xf32, #tpu.memory_space<vmem>>, vector<1x4x256xf32>
    %1 = vector.shape_cast %0 : vector<1x4x256xf32> to vector<4x256xf32>
    %c0_2 = arith.constant 0 : index
    %c0_3 = arith.constant 0 : index
    %c0_4 = arith.constant 0 : index
    %2 = vector.load %arg3[%c0_2, %c0_3, %c0_4] : memref<1x8x256xf32, #tpu.memory_space<vmem>>, vector<1x8x256xf32>
    %3 = vector.shape_cast %2 : vector<1x8x256xf32> to vector<8x256xf32>
    %4 = arith.truncf %1 : vector<4x256xf32> to vector<4x256xbf16>
    %5 = arith.truncf %3 : vector<8x256xf32> to vector<8x256xbf16>
    %c0_5 = arith.constant 0 : index
    %c0_6 = arith.constant 0 : index
    %6 = vector.load %arg4[%c0_5, %c0_6] : memref<48x4xbf16, #tpu.memory_space<vmem>>, vector<48x4xbf16>
    %cst = arith.constant dense<0.000000e+00> : vector<48x256xf32>
    %7 = tpu.matmul %6, %4, %cst {dimension_numbers = #tpu.dot_dimension_numbers<[1], [0], [0], [1], [0, 0, 1, 1], [], []>} : vector<48x4xbf16>, vector<4x256xbf16>, vector<48x256xf32> -> vector<48x256xf32>
    %c0_7 = arith.constant 0 : index
    %c0_8 = arith.constant 0 : index
    %8 = vector.load %arg5[%c0_7, %c0_8] : memref<48x8xbf16, #tpu.memory_space<vmem>>, vector<48x8xbf16>
    %cst_9 = arith.constant dense<0.000000e+00> : vector<48x256xf32>
    %9 = tpu.matmul %8, %5, %cst_9 {dimension_numbers = #tpu.dot_dimension_numbers<[1], [0], [0], [1], [0, 0, 1, 1], [], []>} : vector<48x8xbf16>, vector<8x256xbf16>, vector<48x256xf32> -> vector<48x256xf32>
    %c0_10 = arith.constant 0 : index
    %c0_11 = arith.constant 0 : index
    %10 = vector.load %arg6[%c0_10, %c0_11] : memref<64x1xf32, #tpu.memory_space<vmem>>, vector<64x1xf32>
    %11 = vector.extract_strided_slice %10 {offsets = [0, 0], sizes = [16, 1], strides = [1, 1]} : vector<64x1xf32> to vector<16x1xf32>
    %12 = vector.extract_strided_slice %10 {offsets = [16, 0], sizes = [16, 1], strides = [1, 1]} : vector<64x1xf32> to vector<16x1xf32>
    %13 = vector.extract_strided_slice %10 {offsets = [32, 0], sizes = [16, 1], strides = [1, 1]} : vector<64x1xf32> to vector<16x1xf32>
    %14 = vector.extract_strided_slice %10 {offsets = [48, 0], sizes = [16, 1], strides = [1, 1]} : vector<64x1xf32> to vector<16x1xf32>
    %15 = vector.extract_strided_slice %7 {offsets = [0, 0], sizes = [16, 256], strides = [1, 1]} : vector<48x256xf32> to vector<16x256xf32>
    %16 = vector.broadcast %11 : vector<16x1xf32> to vector<16x256xf32>
    %17 = arith.addf %15, %16 : vector<16x256xf32>
    %18 = vector.extract_strided_slice %9 {offsets = [0, 0], sizes = [16, 256], strides = [1, 1]} : vector<48x256xf32> to vector<16x256xf32>
    %19 = vector.broadcast %12 : vector<16x1xf32> to vector<16x256xf32>
    %20 = arith.addf %18, %19 : vector<16x256xf32>
    %21 = vector.extract_strided_slice %7 {offsets = [16, 0], sizes = [16, 256], strides = [1, 1]} : vector<48x256xf32> to vector<16x256xf32>
    %22 = vector.extract_strided_slice %9 {offsets = [16, 0], sizes = [16, 256], strides = [1, 1]} : vector<48x256xf32> to vector<16x256xf32>
    %23 = arith.addf %21, %22 : vector<16x256xf32>
    %24 = vector.broadcast %13 : vector<16x1xf32> to vector<16x256xf32>
    %25 = arith.addf %23, %24 : vector<16x256xf32>
    %26 = arith.negf %25 : vector<16x256xf32>
    %27 = math.exp %26 : vector<16x256xf32>
    %cst_12 = arith.constant 1.000000e+00 : f32
    %28 = vector.broadcast %cst_12 : f32 to vector<16x256xf32>
    %29 = arith.addf %28, %27 : vector<16x256xf32>
    %30 = arith.divf %28, %29 : vector<16x256xf32>
    %31 = vector.extract_strided_slice %7 {offsets = [32, 0], sizes = [16, 256], strides = [1, 1]} : vector<48x256xf32> to vector<16x256xf32>
    %32 = vector.extract_strided_slice %9 {offsets = [32, 0], sizes = [16, 256], strides = [1, 1]} : vector<48x256xf32> to vector<16x256xf32>
    %33 = arith.addf %31, %32 : vector<16x256xf32>
    %34 = vector.broadcast %14 : vector<16x1xf32> to vector<16x256xf32>
    %35 = arith.addf %33, %34 : vector<16x256xf32>
    %36 = arith.negf %35 : vector<16x256xf32>
    %37 = math.exp %36 : vector<16x256xf32>
    %cst_13 = arith.constant 1.000000e+00 : f32
    %38 = vector.broadcast %cst_13 : f32 to vector<16x256xf32>
    %39 = arith.addf %38, %37 : vector<16x256xf32>
    %40 = arith.divf %38, %39 : vector<16x256xf32>
    %41 = arith.subf %30, %40 : vector<16x256xf32>
    %42 = arith.negf %41 : vector<16x256xf32>
    %43 = math.exp %42 : vector<16x256xf32>
    %cst_14 = arith.constant 1.000000e+00 : f32
    %44 = vector.broadcast %cst_14 : f32 to vector<16x256xf32>
    %45 = arith.addf %44, %43 : vector<16x256xf32>
    %46 = arith.divf %44, %45 : vector<16x256xf32>
    %47 = arith.subf %17, %20 : vector<16x256xf32>
    %48 = arith.mulf %46, %47 : vector<16x256xf32>
    %49 = arith.addf %20, %48 : vector<16x256xf32>
    %50 = arith.truncf %49 : vector<16x256xf32> to vector<16x256xbf16>
    %c0_15 = arith.constant 0 : index
    %c0_16 = arith.constant 0 : index
    %c0_17 = arith.constant 0 : index
    %51 = vector.load %arg7[%c0_15, %c0_16, %c0_17] : memref<1x16x256xbf16, #tpu.memory_space<vmem>>, vector<1x16x256xbf16>
    %52 = vector.shape_cast %51 : vector<1x16x256xbf16> to vector<16x256xbf16>
    %53 = vector.shape_cast %50 : vector<16x256xbf16> to vector<1x16x256xbf16>
    tpu.vector_store %arg7[%c0_15, %c0_16, %c0_17], %53 {strides = array<i32>} : memref<1x16x256xbf16, #tpu.memory_space<vmem>>, vector<1x16x256xbf16>,
    return
  }
  func.func @transform_0(%arg0: i32, %arg1: i32) -> (i32, i32, i32) {
    %c0_i32 = arith.constant 0 : i32
    %c0_i32_0 = arith.constant 0 : i32
    return %arg0, %c0_i32, %arg1 : i32, i32, i32
  }
  func.func @transform_1(%arg0: i32, %arg1: i32) -> (i32, i32, i32) {
    %c0_i32 = arith.constant 0 : i32
    %c0_i32_0 = arith.constant 0 : i32
    return %arg0, %c0_i32, %arg1 : i32, i32, i32
  }
  func.func @transform_2(%arg0: i32, %arg1: i32) -> (i32, i32) {
    %c0_i32 = arith.constant 0 : i32
    %c0_i32_0 = arith.constant 0 : i32
    %c0_i32_1 = arith.constant 0 : i32
    return %c0_i32, %c0_i32_0 : i32, i32
  }
  func.func @transform_3(%arg0: i32, %arg1: i32) -> (i32, i32) {
    %c0_i32 = arith.constant 0 : i32
    %c0_i32_0 = arith.constant 0 : i32
    %c0_i32_1 = arith.constant 0 : i32
    return %c0_i32, %c0_i32_0 : i32, i32
  }
  func.func @transform_4(%arg0: i32, %arg1: i32) -> (i32, i32) {
    %c0_i32 = arith.constant 0 : i32
    %c0_i32_0 = arith.constant 0 : i32
    %c0_i32_1 = arith.constant 0 : i32
    return %c0_i32, %c0_i32_0 : i32, i32
  }
  func.func @transform_5(%arg0: i32, %arg1: i32) -> (i32, i32, i32) {
    %c0_i32 = arith.constant 0 : i32
    %c0_i32_0 = arith.constant 0 : i32
    return %arg0, %c0_i32, %arg1 : i32, i32, i32
  }
}

</mosaic_0001>

<bundles_post_ra>
// kernel: tpu_custom_call.1
= control target key start
LH: loop header
LB: loop body
LE: loop exit
PB: predicated region body
PF: predicated region fallthrough
CT: control target
= control target key end

     0   :  { %10 = vsyncpa [#allocation3], 0  ;;  %s1291_s0 = inlined_call_operand.vmem [shape: f32[2,4,256], index: 0, kind: input, shape index: {}]   ;;  %s1292_s1 = inlined_call_operand.vmem [shape: f32[2,8,256], index: 1, kind: input, shape index: {}]   ;;  %s1293_s2 = inlined_call_operand.vmem [shape: bf16[48,4], index: 2, kind: input, shape index: {}]   ;;  %s1294_s3 = inlined_call_operand.vmem [shape: bf16[48,8], index: 3, kind: input, shape index: {}]   ;;  %s1295_s4 = inlined_call_operand.vmem [shape: f32[64,1], index: 4, kind: input, shape index: {}]   ;;  %s1296_s5 = inlined_call_operand.hbm [shape: bf16[2,16,256], index: 5, kind: output, shape index: {}]  }
   0x1   :  { %12 = vsyncpa [#allocation3 + $0x1], 0  ;;  %s1075_s18 = smov 0   ;;  %s1077_s19 = smov 0  }
   0x2   :  { %s1079_s20 = smov 0   ;;  %s1081_s21 = smov 0  }
   0x3   :  { %s1083_s22 = smov 0   ;;  %s1085_s23 = smov 0  }
   0x4 LB: > { %s790_s24 = sadd.s32 4294967295, %s1039_s23   ;;  %s791_s25 = sadd.s32 4294967294, %s1039_s23   ;;  %s1039_s23 = sphi %s1085_s23, %s18_s23   ;;  %s1035_s22 = sphi %s1083_s22, %s1303_s22   ;;  %s1031_s21 = sphi %s1081_s21, %s1302_s21   ;;  %s1027_s20 = sphi %s1079_s20, %s1301_s20   ;;  %s1023_s19 = sphi %s1077_s19, %s1300_s19   ;;  %s1019_s18 = sphi %s1075_s18, %s1299_s18  }
   0x5   : > { %s30_s26 = sadd.s32 1, %s1035_s22  ;;  %s158_s27 = sadd.s32 1, %s1027_s20 }
   0x6   : > { %p32_p0 = scmp.ge.s32.totalorder %s30_s26, 2  ;;  %p168_p1 = scmp.ne.s32.totalorder %s1027_s20, %s1023_s19 }
   0x7   : > { %p169_p2 = scmp.eq.s32.totalorder %s790_s24, 1  ;;  %p174_p3 = scmp.ne.s32.totalorder %s1023_s19, %s1019_s18 }
   0x8   : > { %s1305_s26 = smov (%p32_p0, %s30_s26), 0  ;;  %p175_p5 = scmp.eq.s32.totalorder %s791_s25, 1 }
   0x9   : > { %p1115_p4 = por %p169_p2, %p168_p1  ;;  %s153_s29 = ssub.s32 %s1035_s22, %s1305_s26 }
   0xa   : > { %p794_p6 = scmp.ge.s32.totalorder %s1039_s23, 1  ;;  %p156_p7 = scmp.eq.s32.totalorder %s153_s29, 0 }
   0xb   : > { %p1122_p8 = por %p175_p5, %p174_p3  ;;  %p228_p9 = scmp.lt.s32.totalorder %s1039_s23, 3 }
   0xc   : > { %s1128_s6 = scalar_select %p156_p7, %s1027_s20, %s158_s27  }
   0xd   : > { %p229_p10 = pnand %p794_p6, %p228_p9 }
   0xe   : > { %p270_p11 = scmp.lt.s32.totalorder (!%p229_p10), %s1031_s21, 1  ;;  %v1041_v0 = vmov (!%p229_p10), 0   ;;  %vm433_vm0 = vcmask (!%p229_p10), 1043456   ;;  %vm332_vm1 = vcmask (!%p229_p10), 1041408   ;;  %v509_v8 = vld [vmem:[%s1295_s4 + $0x30] sm:$0xff] (!%p229_p10)  ;;  %v507_v9 = vld [vmem:[%s1295_s4 + $0x20] sm:$0xff] (!%p229_p10) }
   0xf   : > { %232 = sbr.rel (%p229_p10) target bundleno = 346 (0x15a), region = 40  ;;  %472 = vmatprep.mubr.bf16.mxu0 (!%p229_p10), %v1041_v0  ;;  %371 = vmatprep.mubr.bf16.mxu1 (!%p229_p10), %v1041_v0  ;;  %v907_v13 = vld [vmem:[%s1294_s3] sm:$0xff] (!%p229_p10)   ;;  %v510_v14 = vld [vmem:[%s1295_s4 + $0x38] sm:$0xff] (!%p229_p10)  ;;  %vm423_vm2 = vcmask (!%p229_p10), 64512   ;;  %v508_v15 = vld [vmem:[%s1295_s4 + $0x28] sm:$0xff] (!%p229_p10)  ;;  %vm322_vm3 = vcmask (!%p229_p10), 31744  }
  0x10   : > { %905 = vset.pattern.permute.xlu1 (!%p229_p10), %v1041_v0  ;;  %904 = vset.pattern.permute.xlu0 (!%p229_p10), %v1041_v0  ;;  %v908_v16 = vld [vmem:[%s1293_s2] sm:$0xff] (!%p229_p10)   ;;  %v504_v17 = vld [vmem:[%s1295_s4 + $0x8] sm:$0xff] (!%p229_p10)  ;;  %v506_v20 = vld [vmem:[%s1295_s4 + $0x18] sm:$0xff] (!%p229_p10)  ;;  %s266_s14 = sand.u32 (!%p229_p10), 1, %s1023_s19   ;;  %s837_s16 = sshll.u32 (!%p229_p10), %s1031_s21, 8 }
  0x11   : > { %587 = vperm.xlu1 (!%p229_p10), %905, %v509_v8   ;;  %545 = vperm.xlu0 (!%p229_p10), %904, %v507_v9   ;;  %v503_v18 = vld [vmem:[%s1295_s4] sm:$0xff] (!%p229_p10)  ;;  %v909_v19 = vld [vmem:[%s1294_s3 + $0x8] sm:$0xff] (!%p229_p10)   ;;  %v505_v21 = vld [vmem:[%s1295_s4 + $0x10] sm:$0xff] (!%p229_p10)  ;;  %s1241_s29 = scalar_lea.hbm (!%p229_p10), %s1296_s5, %s837_s16 }
  0x12   : > { %v910_v22 = vld [vmem:[%s1293_s2 + $0x8] sm:$0xff] (!%p229_p10)   ;;  %v911_v23 = vld [vmem:[%s1294_s3 + $0x10] sm:$0xff] (!%p229_p10)  }
  0x13   : > { %v912_v24 = vld [vmem:[%s1293_s2 + $0x10] sm:$0xff] (!%p229_p10)  }
  0x15   : > { %592 = vperm.xlu1 (!%p229_p10), %905, %v510_v14   ;;  %550 = vperm.xlu0 (!%p229_p10), %904, %v508_v15  }
  0x16   : > { %s271_s7 = scalar_select %p270_p11, %s1031_s21, 1 }
  0x17   : > { %s1245_s21 = scalar_lea.sflag [#allocation3], %s266_s14 }
  0x18   : > { %s834_s8 = sshll.u32 %s271_s7, 4  ;;  %s833_s9 = sshll.u32 %s271_s7, 3 }
  0x19   : > { %s287_s12 = scalar_lea.vmem %s1292_s1, %s834_s8  ;;  %s277_s15 = scalar_lea.vmem %s1291_s0, %s833_s9  ;;  %518 = vperm.xlu1 %905, %v504_v17   ;;  %513 = vperm.xlu0 %904, %v503_v18  }
  0x1a   : > { %v293_v1 = vld [vmem:[%s287_s12 + $0x8] sm:$0xff]  ;;  %v292_v2 = vld [vmem:[%s287_s12] sm:$0xff]  ;;  %s1042_s8 = smov [#allocation2]  }
  0x1b   : > { %v291_v3 = vld [vmem:[%s277_s15] sm:$0xff]  ;;  %v300_v4 = vpack.c.bf16 %v293_v1, %v293_v1  ;;  %v299_v5 = vpack.c.bf16 %v292_v2, %v292_v2  ;;  %s795_s15 = sshll.u32 %s266_s14, 4  ;;  %s965_s9 = sshll.u32 %s1042_s8, 4  ;;  %s966_s9 = int_to_ptr.vmem [resolvable:$false] %s965_s9 }
  0x1c   : > { %v295_v6 = vcombine.high %v291_v3, %v291_v3  ;;  %v297_v7 = vpack.c.bf16 %v291_v3, %v291_v3  ;;  %s268_s17 = scalar_lea.vmem [#allocation2], %s795_s15  ;;  %s967_s10 = scalar_lea.vmem %s966_s9, 512 }
  0x1d   : > { %810 = vmatprep.subr.msk.bf16.mxu0 %vm433_vm0, %v300_v4  ;;  %v435_v10 = vsel %vm433_vm0, %v299_v5, 0  ;;  %532 = vperm.xlu1 %905, %v506_v20   ;;  %s693_s24 = sshll.u32 %s268_s17, 4  ;;  %s1243_s24 = int_to_ptr.vmem [resolvable:$true] %s693_s24 }
  0x1e   : > { %v298_v11 = vpack.c.bf16 %v295_v6, %v295_v6  ;;  %v334_v12 = vsel %vm332_vm1, %v297_v7, 0  ;;  %441 = vmatpush1.bf16.msra.mxu0 %v435_v10  ;;  %527 = vperm.xlu0 %904, %v505_v21   ;;  %s961_s7 = scalar_lea.vmem %s1243_s24, 256  ;;  %p968_p1 = scmp.lt.s32.totalorder %s1243_s24, %s966_s9 }
  0x1f   : > { %p962_p12 = scmp.ne.s32.totalorder %s1243_s24, %s961_s7  ;;  %p969_p2 = scmp.lt.s32.totalorder %s967_s10, %s961_s7 }
  0x20   : > { %803 = vmatprep.subr.msk.bf16.mxu1 %vm332_vm1, %v298_v11 }
  0x21   : > { %340 = vmatpush1.bf16.msra.mxu1 %v334_v12  ;;  %811 = vmatmul.mubr.msk.bf16.vlgmr.msra.gmra.mrb[0].mxu0 %vm423_vm2, %v907_v13  ;;  %p963_p13 = pnand %p962_p12, %p1115_p4  ;;  %p970_p3 = por %p969_p2, %p968_p1 }
  0x22   : > { %482 = vmatprep.mubr.bf16.mxu0 %v1041_v0 }
  0x23   : > { %p964_p0 = pneg %p963_p13 }
  0x24   : > { %804 = vmatmul.mubr.msk.bf16.vlgmr.msra.gmra.mrb[0].mxu1 %vm322_vm3, %v908_v16 }
  0x25   : > { %381 = vmatprep.mubr.bf16.mxu1 %v1041_v0  ;;  %p971_p5 = pnand %p970_p3, %p964_p0 }
  0x29   : > { %812 = vmatmul.mubr.msk.bf16.gmra.mrb[4].mxu0 %vm423_vm2, %v909_v19 }
  0x2a   : > { %492 = vmatprep.mubr.bf16.mxu0 %v1041_v0 }
  0x2c   : > { %805 = vmatmul.mubr.msk.bf16.gmra.mrb[4].mxu1 %vm322_vm3, %v910_v22 }
  0x2d   : > { %391 = vmatprep.mubr.bf16.mxu1 %v1041_v0 }
  0x31   : > { %813 = vmatmul.mubr.msk.bf16.gmra.mrb[8].mxu0 %vm423_vm2, %v911_v23 }
  0x34   : > { %806 = vmatmul.mubr.msk.bf16.gmra.mrb[8].mxu1 %vm322_vm3, %v912_v24 }
  0x90   : > { %v546_v25 = vpop.permute.xlu0 %545  ;;  %v1188_v26 = vpop.permute.xlu1 %587 }
  0x94   : > { %v551_v27 = vpop.permute.xlu0 %550  ;;  %v1190_v28 = vpop.permute.xlu1 %592 }
  0x98   : > { %v514_v29 = vpop.permute.xlu0 %513  ;;  %v519_v30 = vpop.permute.xlu1 %518 }
  0x9c   : > { %v533_v34 = vpop.permute.xlu1 %532 }
  0x9d   : > { %v528_v31 = vpop.permute.xlu0 %527 }
  0xf4   : > { %v474_v32 = vpop.f32.mrb[0].mxu0 }
  0xf5   : > { %v476_v33 = vpop.f32.mrb[1].mxu0  ;;  %v1192_v35 = vadd.f32 %v528_v31, %v474_v32 }
  0xf6   : > { %v1194_v36 = vadd.f32 %v528_v31, %v476_v33  ;;  %v478_v38 = vpop.f32.mrb[2].mxu0 }
  0xf7   : > { %v373_v37 = vpop.f32.mrb[0].mxu1  ;;  %v480_v41 = vpop.f32.mrb[3].mxu0  ;;  %v1202_v45 = vadd.f32 %v533_v34, %v478_v38 }
  0xf8   : > { %v1196_v39 = vadd.f32 %v514_v29, %v373_v37  ;;  %v375_v40 = vpop.f32.mrb[1].mxu1  ;;  %v1208_v49 = vadd.f32 %v533_v34, %v480_v41 }
  0xf9   : > { %v1198_v42 = vadd.f32 %v514_v29, %v375_v40  ;;  %v377_v43 = vpop.f32.mrb[2].mxu1 }
  0xfa   : > { %v651_v44 = vsub.f32 %v1196_v39, %v1192_v35  ;;  %v1204_v46 = vadd.f32 %v519_v30, %v377_v43  ;;  %v379_v47 = vpop.f32.mrb[3].mxu1 }
  0xfb   : > { %v652_v48 = vsub.f32 %v1198_v42, %v1194_v36  ;;  %v1210_v50 = vadd.f32 %v519_v30, %v379_v47 }
  0xfc   : > { %v653_v51 = vsub.f32 %v1204_v46, %v1202_v45  ;;  %v484_v53 = vpop.f32.mrb[4].mxu0 }
  0xfd   : > { %v654_v52 = vsub.f32 %v1210_v50, %v1208_v49  ;;  %v486_v54 = vpop.f32.mrb[5].mxu0 }
  0xfe   : > { %v488_v56 = vpop.f32.mrb[6].mxu0 }
  0xff   : > { %v383_v55 = vpop.f32.mrb[4].mxu1  ;;  %v490_v59 = vpop.f32.mrb[7].mxu0 }
 0x100   : > { %v539_v57 = vadd.f32 %v484_v53, %v383_v55  ;;  %v385_v58 = vpop.f32.mrb[5].mxu1 }
 0x101   : > { %v540_v60 = vadd.f32 %v486_v54, %v385_v58  ;;  %v387_v61 = vpop.f32.mrb[6].mxu1 }
 0x102   : > { %v553_v62 = vadd.f32 %v546_v25, %v539_v57  ;;  %v541_v63 = vadd.f32 %v488_v56, %v387_v61  ;;  %v389_v0 = vpop.f32.mrb[7].mxu1 }
 0x103   : > { %v554_v1 = vadd.f32 %v546_v25, %v540_v60  ;;  %v542_v2 = vadd.f32 %v490_v59, %v389_v0 }
 0x104   : > { %v814_v3 = vmul.f32 -1.442695, %v553_v62  ;;  %v555_v4 = vadd.f32 %v551_v27, %v541_v63  ;;  %v494_v7 = vpop.f32.mrb[8].mxu0 }
 0x105   : > { %v815_v5 = vmul.f32 -1.442695, %v554_v1  ;;  %v556_v6 = vadd.f32 %v551_v27, %v542_v2  ;;  %v496_v9 = vpop.f32.mrb[9].mxu0 }
 0x106   : > { %913 = vpow2.f32 %v814_v3  ;;  %v816_v8 = vmul.f32 -1.442695, %v555_v4  ;;  %v498_v12 = vpop.f32.mrb[10].mxu0 }
 0x107   : > { %915 = vpow2.f32 %v815_v5  ;;  %v817_v10 = vmul.f32 -1.442695, %v556_v6  ;;  %v393_v11 = vpop.f32.mrb[8].mxu1  ;;  %v500_v15 = vpop.f32.mrb[11].mxu0 }
 0x108   : > { %917 = vpow2.f32 %v816_v8  ;;  %v581_v13 = vadd.f32 %v494_v7, %v393_v11  ;;  %v395_v14 = vpop.f32.mrb[9].mxu1 }
 0x109   : > { %919 = vpow2.f32 %v817_v10  ;;  %v582_v16 = vadd.f32 %v496_v9, %v395_v14  ;;  %v397_v17 = vpop.f32.mrb[10].mxu1 }
 0x10a   : > { %v595_v18 = vadd.f32 %v1188_v26, %v581_v13  ;;  %v583_v19 = vadd.f32 %v498_v12, %v397_v17  ;;  %v399_v20 = vpop.f32.mrb[11].mxu1 }
 0x10b   : > { %v596_v21 = vadd.f32 %v1188_v26, %v582_v16  ;;  %v584_v22 = vadd.f32 %v500_v15, %v399_v20 }
 0x10c   : > { %v818_v23 = vmul.f32 -1.442695, %v595_v18  ;;  %v597_v24 = vadd.f32 %v1190_v28, %v583_v19 }
 0x10d   : > { %v819_v25 = vmul.f32 -1.442695, %v596_v21  ;;  %v598_v27 = vadd.f32 %v1190_v28, %v584_v22 }
 0x10e   : > { %921 = vpow2.f32 %v818_v23  ;;  %v820_v29 = vmul.f32 -1.442695, %v597_v24 }
 0x10f   : > { %923 = vpow2.f32 %v819_v25  ;;  %v821_v30 = vmul.f32 -1.442695, %v598_v27 }
 0x110   : > { %v914_v31 = vpop.eup %913  ;;  %925 = vpow2.f32 %v820_v29 }
 0x111   : > { %v916_v32 = vpop.eup %915  ;;  %927 = vpow2.f32 %v821_v30  ;;  %v569_v37 = vadd.f32 1.0, %v914_v31 }
 0x112   : > { %v918_v33 = vpop.eup %917  ;;  %v570_v38 = vadd.f32 1.0, %v916_v32 }
 0x113   : > { %v920_v34 = vpop.eup %919  ;;  %v571_v26 = vadd.f32 1.0, %v918_v33  ;;  %929 = vrcp.f32 %v569_v37 }
 0x114   : > { %v572_v40 = vadd.f32 1.0, %v920_v34  ;;  %931 = vrcp.f32 %v570_v38 }
 0x115   : > { %933 = vrcp.f32 %v571_v26 }
 0x116   : > { %935 = vrcp.f32 %v572_v40 }
 0x118   : > { %v922_v41 = vpop.eup %921 }
 0x119   : > { %v924_v43 = vpop.eup %923  ;;  %v611_v28 = vadd.f32 1.0, %v922_v41 }
 0x11a   : > { %v926_v47 = vpop.eup %925  ;;  %v612_v53 = vadd.f32 1.0, %v924_v43 }
 0x11b   : > { %v928_v54 = vpop.eup %927  ;;  %937 = vrcp.f32 %v611_v28  ;;  %v613_v55 = vadd.f32 1.0, %v926_v47 }
 0x11c   : > { %939 = vrcp.f32 %v612_v53  ;;  %v614_v56 = vadd.f32 1.0, %v928_v54 }
 0x11d   : > { %941 = vrcp.f32 %v613_v55  ;;  %v930_v57 = vpop.eup %929 }
 0x11e   : > { %943 = vrcp.f32 %v614_v56  ;;  %v932_v58 = vpop.eup %931 }
 0x11f   : > { %v934_v59 = vpop.eup %933 }
 0x120   : > { %v936_v60 = vpop.eup %935 }
 0x125   : > { %v938_v61 = vpop.eup %937 }
 0x126   : > { %v940_v62 = vpop.eup %939  ;;  %v623_v63 = vsub.f32 %v930_v57, %v938_v61 }
 0x127   : > { %v942_v0 = vpop.eup %941  ;;  %v624_v1 = vsub.f32 %v932_v58, %v940_v62 }
 0x128   : > { %v944_v2 = vpop.eup %943  ;;  %v822_v3 = vmul.f32 -1.442695, %v623_v63  ;;  %v625_v4 = vsub.f32 %v934_v59, %v942_v0 }
 0x129   : > { %v823_v5 = vmul.f32 -1.442695, %v624_v1  ;;  %v626_v6 = vsub.f32 %v936_v60, %v944_v2 }
 0x12a   : > { %945 = vpow2.f32 %v822_v3  ;;  %v824_v7 = vmul.f32 -1.442695, %v625_v4 }
 0x12b   : > { %947 = vpow2.f32 %v823_v5  ;;  %v825_v8 = vmul.f32 -1.442695, %v626_v6 }
 0x12c   : > { %949 = vpow2.f32 %v824_v7 }
 0x12d   : > { %951 = vpow2.f32 %v825_v8 }
 0x134   : > { %v946_v9 = vpop.eup %945 }
 0x135   : > { %v948_v10 = vpop.eup %947  ;;  %v639_v11 = vadd.f32 1.0, %v946_v9 }
 0x136   : > { %v950_v12 = vpop.eup %949  ;;  %v640_v13 = vadd.f32 1.0, %v948_v10 }
 0x137   : > { %v952_v14 = vpop.eup %951  ;;  %953 = vrcp.f32 %v639_v11  ;;  %v641_v15 = vadd.f32 1.0, %v950_v12 }
 0x138   : > { %955 = vrcp.f32 %v640_v13  ;;  %v642_v16 = vadd.f32 1.0, %v952_v14 }
 0x139   : > { %957 = vrcp.f32 %v641_v15 }
 0x13a   : > { %959 = vrcp.f32 %v642_v16 }
 0x141   : > { %v954_v17 = vpop.eup %953 }
 0x142   : > { %v956_v18 = vpop.eup %955  ;;  %v655_v19 = vmul.f32 %v954_v17, %v651_v44 }
 0x143   : > { %v958_v20 = vpop.eup %957  ;;  %v656_v21 = vmul.f32 %v956_v18, %v652_v48 }
 0x144   : > { %v960_v22 = vpop.eup %959  ;;  %v657_v23 = vmul.f32 %v958_v20, %v653_v51  ;;  %v659_v24 = vadd.f32 %v655_v19, %v1192_v35 }
 0x145   : > { %v658_v25 = vmul.f32 %v960_v22, %v654_v52  ;;  %v660_v39 = vadd.f32 %v656_v21, %v1194_v36 }
 0x146   : > { %v661_v42 = vadd.f32 %v657_v23, %v1202_v45 }
 0x147   : > { %v662_v44 = vadd.f32 %v658_v25, %v1208_v49  ;;  %v835_v48 = vpack.c.bf16 %v660_v39, %v659_v24 }
 0x149   : > { %v836_v35 = vpack.c.bf16 %v662_v44, %v661_v42  ;;  %675 = vst [vmem:[%s268_s17] sm:$0xff] %v835_v48 }
 0x14b   : > { %676 = vst [vmem:[%s268_s17 + $0x8] sm:$0xff] %v836_v35 }
 0x14c   : > { %974 = shalt.err (!%p971_p5)
}
 0x14d   : > { %s975_s11 = scalar_lea.hbm %s1241_s29, 256  ;;  %s979_s14 = scalar_lea.hbm %s1296_s5, 512 }
 0x14e   : > { %p976_p6 = scmp.ne.s32.totalorder %s1241_s29, %s975_s11  ;;  %p980_p10 = scmp.lt.u32.totalorder %s1241_s29, %s1296_s5 }
 0x14f   : > { %p981_p11 = scmp.lt.u32.totalorder %s979_s14, %s975_s11  ;;  %p983_p13 = scmp.lt.u32.totalorder %s975_s11, %s1241_s29 }
 0x150   : > { %p977_p7 = pnand %p976_p6, %p1115_p4 }
 0x151   : > { %p982_p12 = por %p981_p11, %p980_p10 }
 0x152   : > { %p978_p9 = pneg %p977_p7 }
 0x153   : > { %p984_p0 = por %p983_p13, %p982_p12 }
 0x155   : > { %p985_p1 = pnand %p984_p0, %p978_p9 }
 0x157   : > { %988 = shalt.err (!%p985_p1)
}
 0x158   : > { %s1043_s17 = smov 128   ;;  %s1044_s25 = smov 8  }
 0x159   : > { %846 = dma.vmem_to_hbm [thread:$0]  (%p1115_p4), %s1243_s24, 256, %s1241_s29, %s1245_s21, %s1043_s17, %s1043_s17, %s1044_s25  }
 0x15a PF: > { %p852_p2 = scmp.ge.s32.totalorder %s1039_s23, 2  ;;  %s708_s27 = sand.u32 1, %s1019_s18  }
 0x15b   : > { %s709_s7 = scalar_lea.sflag [#allocation3], %s708_s27 }
 0x15c   : > { %p849_p3 = pnand %p852_p2, %p1122_p8 }
 0x15e   : > { %1014 = dma.done.wait (!%p849_p3), %s709_s7, 256  }
 0x15f   : > { %1016 = vsyncadd (!%p849_p3), %s709_s7, 4294967040  ;;  %s18_s23 = sadd.s32 1, %s1039_s23   ;;  %s1299_s18 = smov %s1023_s19 }
 0x160   : > { %p15_p5 = scmp.ge.s32.totalorder %s18_s23, 4   ;;  %s1300_s19 = smov %s1027_s20 }
 0x161   : > { %s1301_s20 = smov %s1128_s6  ;;  %s1302_s21 = smov %s1035_s22 }
 0x162   : > { %s1303_s22 = smov %s1305_s26  ;;  %17 = sbr.rel (!%p15_p5) target bundleno = 4 (0x4), region = 78 }
 0x169   :  { %714 = vsyncpa [#allocation3], 1 }
 0x16a   :  { %716 = vsyncpa [#allocation3 + $0x1], 1 }

</bundles_post_ra>
